<compile_context>
chip_gen: v5e
topology: v5e:2x2
jax: 0.10.0
libtpu: 0.0.40
codegen_flags: <defaults>
</compile_context>

<pallas_src>
import functools
import math

import jax
import jax.numpy as jnp
from jax import lax
from jax.experimental import pallas as pl
from jax.experimental.pallas import tpu as pltpu


# ----------------------------------------------------------------------------
# Fused kernel: all heads + output projection for one batch row (grid = (B,))
# ----------------------------------------------------------------------------
def _fused_mha_kernel(x_ref, wqkv_ref, wp_ref, bp_ref, o_ref, *, n_head, head_size):
    # x_ref:    (1, T, C)      current batch row
    # wqkv_ref: (C, 3*C)       stacked [K | Q | V] weights, head-major inside each block
    # wp_ref:   (C, C)         projection weight
    # bp_ref:   (1, C)         projection bias
    # o_ref:    (T, C)         lane-dense output slab for this batch row
    x = x_ref[0]                                   # (T, C)
    T, C = x.shape
    H = head_size

    # One big MXU push for k/q/v of every head: (T, C) @ (C, 3C) -> (T, 3C)
    kqv = jnp.dot(x, wqkv_ref[...], preferred_element_type=jnp.float32)

    wp = wp_ref[...]                               # (C, C)
    bp = bp_ref[...]                               # (1, C)

    rows = lax.broadcasted_iota(jnp.int32, (T, T), 0)
    cols = lax.broadcasted_iota(jnp.int32, (T, T), 1)
    causal = rows >= cols
    scale = head_size ** (-0.5)

    acc = jnp.zeros((T, C), jnp.float32)
    for h in range(n_head):                        # static unrolled loop (n_head small)
        k = kqv[:, h * H:(h + 1) * H]                          # (T, H)
        q = kqv[:, C + h * H:C + (h + 1) * H]                  # (T, H)
        v = kqv[:, 2 * C + h * H:2 * C + (h + 1) * H]          # (T, H)

        # q @ k^T via dot_general contracting last dims (no explicit transpose of k)
        wei = lax.dot_general(
            q, k, (((1,), (1,)), ((), ())),
            preferred_element_type=jnp.float32,
        ) * scale                                              # (T, T)

        wei = jnp.where(causal, wei, -1e30)

        # softmax along the last axis; divide goes to the EUP via approx reciprocal
        wei = wei - jnp.max(wei, axis=-1, keepdims=True)
        p = jnp.exp(wei)
        p = p * pl.reciprocal(jnp.sum(p, axis=-1, keepdims=True), approx=True)

        head_out = jnp.dot(p, v, preferred_element_type=jnp.float32)   # (T, H)

        # Fused output projection: cat @ Wp == sum_h head_out_h @ Wp[h*H:(h+1)*H, :]
        acc = acc + jnp.dot(head_out, wp[h * H:(h + 1) * H, :],
                            preferred_element_type=jnp.float32)

    # TODO(synk): dropout on attention weights / projection output is identity (eval mode).
    o_ref[...] = acc + bp


# ----------------------------------------------------------------------------
# Wrapper
# ----------------------------------------------------------------------------
def sequential_multihead_attention(x, wk, wq, wv, wp, bp):
    """
    x  : (B, T, C) float32
    wk, wq, wv : (n_head, C, H) float32   (per-head Linear weights, y = x @ W)
    wp : (C, C) float32, bp : (C,) float32
    returns (B, T, C) float32
    """
    B, T, C = x.shape
    n_head, _, H = wk.shape
    assert n_head * H == C

    # Stack per-head weights host-side into one (C, 3*C) matrix: [K | Q | V],
    # each block laid out head-major so slices match torch.cat head order.
    w_k = jnp.transpose(wk, (1, 0, 2)).reshape(C, n_head * H)
    w_q = jnp.transpose(wq, (1, 0, 2)).reshape(C, n_head * H)
    w_v = jnp.transpose(wv, (1, 0, 2)).reshape(C, n_head * H)
    wqkv = jnp.concatenate([w_k, w_q, w_v], axis=1)            # (C, 3*C)

    kernel = functools.partial(_fused_mha_kernel, n_head=n_head, head_size=H)

    out2d = pl.pallas_call(
        kernel,
        out_shape=jax.ShapeDtypeStruct((B * T, C), jnp.float32),
        grid_spec=pltpu.PrefetchScalarGridSpec(
            num_scalar_prefetch=0,
            grid=(B,),
            in_specs=[
                pl.BlockSpec((1, T, C), lambda b: (b, 0, 0)),      # x (one batch row)
                pl.BlockSpec((C, 3 * C), lambda b: (0, 0)),        # stacked qkv weights
                pl.BlockSpec((C, C), lambda b: (0, 0)),            # projection weight
                pl.BlockSpec((1, C), lambda b: (0, 0)),            # projection bias
            ],
            out_specs=pl.BlockSpec((T, C), lambda b: (b, 0)),      # lane-dense slab
        ),
        compiler_params=pltpu.CompilerParams(
            dimension_semantics=("parallel",),
        ),
    )(x, wqkv, wp, bp.reshape(1, C))

    # Rows of out2d are already in (batch-major, seq) order -> free reshape, no transpose.
    return out2d.reshape(B, T, C)


# ----------------------------------------------------------------------------
# Main
# ----------------------------------------------------------------------------
if __name__ == "__main__":
    # Module hyperparameters (small, consistent with the forward):
    n_embd = 32
    n_head = 4
    block_size = 8        # T must be <= block_size (tril buffer)
    head_size = n_embd // n_head

    B, T, C = 2, block_size, n_embd

    key = jax.random.PRNGKey(0)
    kx, kk, kq, kv, kp, kb = jax.random.split(key, 6)

    # Deterministic parameter init (PyTorch-style uniform(-1/sqrt(fan_in), 1/sqrt(fan_in))).
    bound_h = 1.0 / math.sqrt(n_embd)
    wk = jax.random.uniform(kk, (n_head, C, head_size), jnp.float32, -bound_h, bound_h)
    wq = jax.random.uniform(kq, (n_head, C, head_size), jnp.float32, -bound_h, bound_h)
    wv = jax.random.uniform(kv, (n_head, C, head_size), jnp.float32, -bound_h, bound_h)
    bound_p = 1.0 / math.sqrt(n_embd)
    wp = jax.random.uniform(kp, (C, C), jnp.float32, -bound_p, bound_p)
    bp = jax.random.uniform(kb, (C,), jnp.float32, -bound_p, bound_p)

    x = jax.random.normal(kx, (B, T, C), jnp.float32)

    out = sequential_multihead_attention(x, wk, wq, wv, wp, bp)
    out = jax.block_until_ready(out)
    assert out.shape == (B, T, C)
    assert jnp.all(jnp.isfinite(out))

    # Cross-check against a pure-JAX reference of the PyTorch forward.
    def ref(x):
        outs = []
        for h in range(n_head):
            k = x @ wk[h]
            q = x @ wq[h]
            v = x @ wv[h]
            wei = (q @ jnp.swapaxes(k, -2, -1)) * head_size ** (-0.5)
            mask = jnp.tril(jnp.ones((T, T), bool))
            wei = jnp.where(mask, wei, -jnp.inf)
            wei = jax.nn.softmax(wei, axis=-1)
            outs.append(wei @ v)
        cat = jnp.concatenate(outs, axis=-1)
        return cat @ wp + bp

    ref_out = ref(x)
    # Slightly relaxed tolerance: softmax normalization uses the EUP approximate
    # reciprocal (pl.reciprocal(..., approx=True), ~1e-4 relative error).
    assert jnp.allclose(out, ref_out, atol=2e-3, rtol=2e-3)

    print("KERNEL_OK")
</pallas_src>

<mosaic_0001>
module attributes {stable_mosaic.version = 11 : i64} {
  func.func @_fused_mha_kernel(%arg0: i32, %arg1: memref<1x8x32xf32, #tpu.memory_space<vmem>>, %arg2: memref<32x96xf32, #tpu.memory_space<vmem>>, %arg3: memref<32x32xf32, #tpu.memory_space<vmem>>, %arg4: memref<1x32xf32, #tpu.memory_space<vmem>>, %arg5: memref<8x32xf32, #tpu.memory_space<vmem>>) attributes {dimension_semantics = [#tpu.dimension_semantics<parallel>], iteration_bounds = array<i64: 2>, scalar_prefetch = 0 : i64, scratch_operands = 0 : i64, tpu.core_type = #tpu.core_type<tc>, window_params = [{transform_indices = @transform_0, window_bounds = array<i64: 1, 8, 32>}, {pipeline_mode = #tpu.pipeline_mode<synchronous>, transform_indices = @transform_1, window_bounds = array<i64: 32, 96>}, {pipeline_mode = #tpu.pipeline_mode<synchronous>, transform_indices = @transform_2, window_bounds = array<i64: 32, 32>}, {pipeline_mode = #tpu.pipeline_mode<synchronous>, transform_indices = @transform_3, window_bounds = array<i64: 1, 32>}, {transform_indices = @transform_4, window_bounds = array<i64: 8, 32>}]} {
    %c0 = arith.constant 0 : index
    %c0_0 = arith.constant 0 : index
    %c0_1 = arith.constant 0 : index
    %0 = vector.load %arg1[%c0, %c0_0, %c0_1] : memref<1x8x32xf32, #tpu.memory_space<vmem>>, vector<1x8x32xf32>
    %1 = vector.shape_cast %0 : vector<1x8x32xf32> to vector<8x32xf32>
    %c0_2 = arith.constant 0 : index
    %c0_3 = arith.constant 0 : index
    %2 = vector.load %arg2[%c0_2, %c0_3] : memref<32x96xf32, #tpu.memory_space<vmem>>, vector<32x96xf32>
    %cst = arith.constant dense<0.000000e+00> : vector<8x96xf32>
    %3 = tpu.matmul %1, %2, %cst {dimension_numbers = #tpu.dot_dimension_numbers<[1], [0], [0], [1], [0, 0, 1, 1], [], []>} : vector<8x32xf32>, vector<32x96xf32>, vector<8x96xf32> -> vector<8x96xf32>
    %c0_4 = arith.constant 0 : index
    %c0_5 = arith.constant 0 : index
    %4 = vector.load %arg3[%c0_4, %c0_5] : memref<32x32xf32, #tpu.memory_space<vmem>>, vector<32x32xf32>
    %c0_6 = arith.constant 0 : index
    %c0_7 = arith.constant 0 : index
    %5 = vector.load %arg4[%c0_6, %c0_7] : memref<1x32xf32, #tpu.memory_space<vmem>>, vector<1x32xf32>
    %6 = tpu.iota {dimensions = array<i32: 0>} : vector<8x8xi32>
    %7 = tpu.iota {dimensions = array<i32: 1>} : vector<8x8xi32>
    %8 = arith.cmpi sge, %6, %7 : vector<8x8xi32>
    %cst_8 = arith.constant 0.000000e+00 : f32
    %9 = vector.broadcast %cst_8 : f32 to vector<8x32xf32>
    %10 = vector.extract_strided_slice %3 {offsets = [0, 0], sizes = [8, 8], strides = [1, 1]} : vector<8x96xf32> to vector<8x8xf32>
    %11 = vector.extract_strided_slice %3 {offsets = [0, 32], sizes = [8, 8], strides = [1, 1]} : vector<8x96xf32> to vector<8x8xf32>
    %12 = vector.extract_strided_slice %3 {offsets = [0, 64], sizes = [8, 8], strides = [1, 1]} : vector<8x96xf32> to vector<8x8xf32>
    %cst_9 = arith.constant dense<0.000000e+00> : vector<8x8xf32>
    %13 = tpu.matmul %11, %10, %cst_9 {dimension_numbers = #tpu.dot_dimension_numbers<[1], [1], [0], [0], [0, 0, 1, 0], [], []>} : vector<8x8xf32>, vector<8x8xf32>, vector<8x8xf32> -> vector<8x8xf32>
    %cst_10 = arith.constant 0.353553385 : f32
    %14 = vector.broadcast %cst_10 : f32 to vector<8x8xf32>
    %15 = arith.mulf %13, %14 : vector<8x8xf32>
    %cst_11 = arith.constant -1.000000e+30 : f32
    %16 = vector.broadcast %cst_11 : f32 to vector<8x8xf32>
    %17 = arith.select %8, %15, %16 : vector<8x8xi1>, vector<8x8xf32>
    %cst_12 = arith.constant dense<0xFF800000> : vector<8xf32>
    %18 = vector.multi_reduction <maximumf>, %17, %cst_12 [1] : vector<8x8xf32> to vector<8xf32>
    %19 = vector.shape_cast %18 : vector<8xf32> to vector<8x1xf32>
    %20 = vector.broadcast %19 : vector<8x1xf32> to vector<8x8xf32>
    %21 = arith.subf %17, %20 : vector<8x8xf32>
    %22 = math.exp %21 : vector<8x8xf32>
    %cst_13 = arith.constant dense<0.000000e+00> : vector<8xf32>
    %23 = vector.multi_reduction <add>, %22, %cst_13 [1] : vector<8x8xf32> to vector<8xf32>
    %24 = vector.shape_cast %23 : vector<8xf32> to vector<8x1xf32>
    %25 = tpu.reciprocal %24 {approx = true} : vector<8x1xf32> -> vector<8x1xf32>
    %26 = vector.broadcast %25 : vector<8x1xf32> to vector<8x8xf32>
    %27 = arith.mulf %22, %26 : vector<8x8xf32>
    %cst_14 = arith.constant dense<0.000000e+00> : vector<8x8xf32>
    %28 = tpu.matmul %27, %12, %cst_14 {dimension_numbers = #tpu.dot_dimension_numbers<[1], [0], [0], [1], [0, 0, 1, 1], [], []>} : vector<8x8xf32>, vector<8x8xf32>, vector<8x8xf32> -> vector<8x8xf32>
    %29 = vector.extract_strided_slice %4 {offsets = [0, 0], sizes = [8, 32], strides = [1, 1]} : vector<32x32xf32> to vector<8x32xf32>
    %cst_15 = arith.constant dense<0.000000e+00> : vector<8x32xf32>
    %30 = tpu.matmul %28, %29, %cst_15 {dimension_numbers = #tpu.dot_dimension_numbers<[1], [0], [0], [1], [0, 0, 1, 1], [], []>} : vector<8x8xf32>, vector<8x32xf32>, vector<8x32xf32> -> vector<8x32xf32>
    %31 = arith.addf %9, %30 : vector<8x32xf32>
    %32 = vector.extract_strided_slice %3 {offsets = [0, 8], sizes = [8, 8], strides = [1, 1]} : vector<8x96xf32> to vector<8x8xf32>
    %33 = vector.extract_strided_slice %3 {offsets = [0, 40], sizes = [8, 8], strides = [1, 1]} : vector<8x96xf32> to vector<8x8xf32>
    %34 = vector.extract_strided_slice %3 {offsets = [0, 72], sizes = [8, 8], strides = [1, 1]} : vector<8x96xf32> to vector<8x8xf32>
    %cst_16 = arith.constant dense<0.000000e+00> : vector<8x8xf32>
    %35 = tpu.matmul %33, %32, %cst_16 {dimension_numbers = #tpu.dot_dimension_numbers<[1], [1], [0], [0], [0, 0, 1, 0], [], []>} : vector<8x8xf32>, vector<8x8xf32>, vector<8x8xf32> -> vector<8x8xf32>
    %cst_17 = arith.constant 0.353553385 : f32
    %36 = vector.broadcast %cst_17 : f32 to vector<8x8xf32>
    %37 = arith.mulf %35, %36 : vector<8x8xf32>
    %cst_18 = arith.constant -1.000000e+30 : f32
    %38 = vector.broadcast %cst_18 : f32 to vector<8x8xf32>
    %39 = arith.select %8, %37, %38 : vector<8x8xi1>, vector<8x8xf32>
    %cst_19 = arith.constant dense<0xFF800000> : vector<8xf32>
    %40 = vector.multi_reduction <maximumf>, %39, %cst_19 [1] : vector<8x8xf32> to vector<8xf32>
    %41 = vector.shape_cast %40 : vector<8xf32> to vector<8x1xf32>
    %42 = vector.broadcast %41 : vector<8x1xf32> to vector<8x8xf32>
    %43 = arith.subf %39, %42 : vector<8x8xf32>
    %44 = math.exp %43 : vector<8x8xf32>
    %cst_20 = arith.constant dense<0.000000e+00> : vector<8xf32>
    %45 = vector.multi_reduction <add>, %44, %cst_20 [1] : vector<8x8xf32> to vector<8xf32>
    %46 = vector.shape_cast %45 : vector<8xf32> to vector<8x1xf32>
    %47 = tpu.reciprocal %46 {approx = true} : vector<8x1xf32> -> vector<8x1xf32>
    %48 = vector.broadcast %47 : vector<8x1xf32> to vector<8x8xf32>
    %49 = arith.mulf %44, %48 : vector<8x8xf32>
    %cst_21 = arith.constant dense<0.000000e+00> : vector<8x8xf32>
    %50 = tpu.matmul %49, %34, %cst_21 {dimension_numbers = #tpu.dot_dimension_numbers<[1], [0], [0], [1], [0, 0, 1, 1], [], []>} : vector<8x8xf32>, vector<8x8xf32>, vector<8x8xf32> -> vector<8x8xf32>
    %51 = vector.extract_strided_slice %4 {offsets = [8, 0], sizes = [8, 32], strides = [1, 1]} : vector<32x32xf32> to vector<8x32xf32>
    %cst_22 = arith.constant dense<0.000000e+00> : vector<8x32xf32>
    %52 = tpu.matmul %50, %51, %cst_22 {dimension_numbers = #tpu.dot_dimension_numbers<[1], [0], [0], [1], [0, 0, 1, 1], [], []>} : vector<8x8xf32>, vector<8x32xf32>, vector<8x32xf32> -> vector<8x32xf32>
    %53 = arith.addf %31, %52 : vector<8x32xf32>
    %54 = vector.extract_strided_slice %3 {offsets = [0, 16], sizes = [8, 8], strides = [1, 1]} : vector<8x96xf32> to vector<8x8xf32>
    %55 = vector.extract_strided_slice %3 {offsets = [0, 48], sizes = [8, 8], strides = [1, 1]} : vector<8x96xf32> to vector<8x8xf32>
    %56 = vector.extract_strided_slice %3 {offsets = [0, 80], sizes = [8, 8], strides = [1, 1]} : vector<8x96xf32> to vector<8x8xf32>
    %cst_23 = arith.constant dense<0.000000e+00> : vector<8x8xf32>
    %57 = tpu.matmul %55, %54, %cst_23 {dimension_numbers = #tpu.dot_dimension_numbers<[1], [1], [0], [0], [0, 0, 1, 0], [], []>} : vector<8x8xf32>, vector<8x8xf32>, vector<8x8xf32> -> vector<8x8xf32>
    %cst_24 = arith.constant 0.353553385 : f32
    %58 = vector.broadcast %cst_24 : f32 to vector<8x8xf32>
    %59 = arith.mulf %57, %58 : vector<8x8xf32>
    %cst_25 = arith.constant -1.000000e+30 : f32
    %60 = vector.broadcast %cst_25 : f32 to vector<8x8xf32>
    %61 = arith.select %8, %59, %60 : vector<8x8xi1>, vector<8x8xf32>
    %cst_26 = arith.constant dense<0xFF800000> : vector<8xf32>
    %62 = vector.multi_reduction <maximumf>, %61, %cst_26 [1] : vector<8x8xf32> to vector<8xf32>
    %63 = vector.shape_cast %62 : vector<8xf32> to vector<8x1xf32>
    %64 = vector.broadcast %63 : vector<8x1xf32> to vector<8x8xf32>
    %65 = arith.subf %61, %64 : vector<8x8xf32>
    %66 = math.exp %65 : vector<8x8xf32>
    %cst_27 = arith.constant dense<0.000000e+00> : vector<8xf32>
    %67 = vector.multi_reduction <add>, %66, %cst_27 [1] : vector<8x8xf32> to vector<8xf32>
    %68 = vector.shape_cast %67 : vector<8xf32> to vector<8x1xf32>
    %69 = tpu.reciprocal %68 {approx = true} : vector<8x1xf32> -> vector<8x1xf32>
    %70 = vector.broadcast %69 : vector<8x1xf32> to vector<8x8xf32>
    %71 = arith.mulf %66, %70 : vector<8x8xf32>
    %cst_28 = arith.constant dense<0.000000e+00> : vector<8x8xf32>
    %72 = tpu.matmul %71, %56, %cst_28 {dimension_numbers = #tpu.dot_dimension_numbers<[1], [0], [0], [1], [0, 0, 1, 1], [], []>} : vector<8x8xf32>, vector<8x8xf32>, vector<8x8xf32> -> vector<8x8xf32>
    %73 = vector.extract_strided_slice %4 {offsets = [16, 0], sizes = [8, 32], strides = [1, 1]} : vector<32x32xf32> to vector<8x32xf32>
    %cst_29 = arith.constant dense<0.000000e+00> : vector<8x32xf32>
    %74 = tpu.matmul %72, %73, %cst_29 {dimension_numbers = #tpu.dot_dimension_numbers<[1], [0], [0], [1], [0, 0, 1, 1], [], []>} : vector<8x8xf32>, vector<8x32xf32>, vector<8x32xf32> -> vector<8x32xf32>
    %75 = arith.addf %53, %74 : vector<8x32xf32>
    %76 = vector.extract_strided_slice %3 {offsets = [0, 24], sizes = [8, 8], strides = [1, 1]} : vector<8x96xf32> to vector<8x8xf32>
    %77 = vector.extract_strided_slice %3 {offsets = [0, 56], sizes = [8, 8], strides = [1, 1]} : vector<8x96xf32> to vector<8x8xf32>
    %78 = vector.extract_strided_slice %3 {offsets = [0, 88], sizes = [8, 8], strides = [1, 1]} : vector<8x96xf32> to vector<8x8xf32>
    %cst_30 = arith.constant dense<0.000000e+00> : vector<8x8xf32>
    %79 = tpu.matmul %77, %76, %cst_30 {dimension_numbers = #tpu.dot_dimension_numbers<[1], [1], [0], [0], [0, 0, 1, 0], [], []>} : vector<8x8xf32>, vector<8x8xf32>, vector<8x8xf32> -> vector<8x8xf32>
    %cst_31 = arith.constant 0.353553385 : f32
    %80 = vector.broadcast %cst_31 : f32 to vector<8x8xf32>
    %81 = arith.mulf %79, %80 : vector<8x8xf32>
    %cst_32 = arith.constant -1.000000e+30 : f32
    %82 = vector.broadcast %cst_32 : f32 to vector<8x8xf32>
    %83 = arith.select %8, %81, %82 : vector<8x8xi1>, vector<8x8xf32>
    %cst_33 = arith.constant dense<0xFF800000> : vector<8xf32>
    %84 = vector.multi_reduction <maximumf>, %83, %cst_33 [1] : vector<8x8xf32> to vector<8xf32>
    %85 = vector.shape_cast %84 : vector<8xf32> to vector<8x1xf32>
    %86 = vector.broadcast %85 : vector<8x1xf32> to vector<8x8xf32>
    %87 = arith.subf %83, %86 : vector<8x8xf32>
    %88 = math.exp %87 : vector<8x8xf32>
    %cst_34 = arith.constant dense<0.000000e+00> : vector<8xf32>
    %89 = vector.multi_reduction <add>, %88, %cst_34 [1] : vector<8x8xf32> to vector<8xf32>
    %90 = vector.shape_cast %89 : vector<8xf32> to vector<8x1xf32>
    %91 = tpu.reciprocal %90 {approx = true} : vector<8x1xf32> -> vector<8x1xf32>
    %92 = vector.broadcast %91 : vector<8x1xf32> to vector<8x8xf32>
    %93 = arith.mulf %88, %92 : vector<8x8xf32>
    %cst_35 = arith.constant dense<0.000000e+00> : vector<8x8xf32>
    %94 = tpu.matmul %93, %78, %cst_35 {dimension_numbers = #tpu.dot_dimension_numbers<[1], [0], [0], [1], [0, 0, 1, 1], [], []>} : vector<8x8xf32>, vector<8x8xf32>, vector<8x8xf32> -> vector<8x8xf32>
    %95 = vector.extract_strided_slice %4 {offsets = [24, 0], sizes = [8, 32], strides = [1, 1]} : vector<32x32xf32> to vector<8x32xf32>
    %cst_36 = arith.constant dense<0.000000e+00> : vector<8x32xf32>
    %96 = tpu.matmul %94, %95, %cst_36 {dimension_numbers = #tpu.dot_dimension_numbers<[1], [0], [0], [1], [0, 0, 1, 1], [], []>} : vector<8x8xf32>, vector<8x32xf32>, vector<8x32xf32> -> vector<8x32xf32>
    %97 = arith.addf %75, %96 : vector<8x32xf32>
    %98 = vector.broadcast %5 : vector<1x32xf32> to vector<8x32xf32>
    %99 = arith.addf %97, %98 : vector<8x32xf32>
    %c0_37 = arith.constant 0 : index
    %c0_38 = arith.constant 0 : index
    %100 = vector.load %arg5[%c0_37, %c0_38] : memref<8x32xf32, #tpu.memory_space<vmem>>, vector<8x32xf32>
    tpu.vector_store %arg5[%c0_37, %c0_38], %99 {strides = array<i32>} : memref<8x32xf32, #tpu.memory_space<vmem>>, vector<8x32xf32>,
    return
  }
  func.func @transform_0(%arg0: i32) -> (i32, i32, i32) {
    %c0_i32 = arith.constant 0 : i32
    %c0_i32_0 = arith.constant 0 : i32
    %c0_i32_1 = arith.constant 0 : i32
    return %arg0, %c0_i32, %c0_i32_0 : i32, i32, i32
  }
  func.func @transform_1(%arg0: i32) -> (i32, i32) {
    %c0_i32 = arith.constant 0 : i32
    %c0_i32_0 = arith.constant 0 : i32
    %c0_i32_1 = arith.constant 0 : i32
    return %c0_i32, %c0_i32_0 : i32, i32
  }
  func.func @transform_2(%arg0: i32) -> (i32, i32) {
    %c0_i32 = arith.constant 0 : i32
    %c0_i32_0 = arith.constant 0 : i32
    %c0_i32_1 = arith.constant 0 : i32
    return %c0_i32, %c0_i32_0 : i32, i32
  }
  func.func @transform_3(%arg0: i32) -> (i32, i32) {
    %c0_i32 = arith.constant 0 : i32
    %c0_i32_0 = arith.constant 0 : i32
    %c0_i32_1 = arith.constant 0 : i32
    return %c0_i32, %c0_i32_0 : i32, i32
  }
  func.func @transform_4(%arg0: i32) -> (i32, i32) {
    %c0_i32 = arith.constant 0 : i32
    %c0_i32_0 = arith.constant 0 : i32
    return %arg0, %c0_i32 : i32, i32
  }
}

</mosaic_0001>

<bundles_post_ra>
// kernel: tpu_custom_call.1
= control target key start
LH: loop header
LB: loop body
LE: loop exit
PB: predicated region body
PF: predicated region fallthrough
CT: control target
= control target key end

     0   :  { %9 = vsyncpa [#allocation3], 0  ;;  %s1290_s0 = inlined_call_operand.hbm [shape: f32[2,8,32], index: 0, kind: input, shape index: {}]   ;;  %s1291_s1 = inlined_call_operand.hbm [shape: f32[32,96], index: 1, kind: input, shape index: {}]   ;;  %s1292_s2 = inlined_call_operand.hbm [shape: f32[32,32], index: 2, kind: input, shape index: {}]   ;;  %s1293_s3 = inlined_call_operand.vmem [shape: f32[1,32], index: 3, kind: input, shape index: {}]   ;;  %s1294_s4 = inlined_call_operand.hbm [shape: f32[16,32], index: 4, kind: output, shape index: {}]  }
   0x1   :  { %11 = vsyncpa [#allocation3 + $0x1], 0 }
   0x2   :  { %12 = vsyncpa [#allocation6], 0 }
   0x3   :  { %13 = vsyncpa [#allocation4], 0 }
   0x4   :  { %15 = vsyncpa [#allocation4 + $0x1], 0  ;;  %s1091_s15 = smov 0   ;;  %s1093_s16 = smov 0  }
   0x5   :  { %s1095_s17 = smov 0   ;;  %s1097_s18 = smov 0  }
   0x6 LB: > { %s152_s21 = sshll.u32 %s1291_s1, 4  ;;  %s1115_s22 = sadd.s32 4294967295, %s1049_s18   ;;  %s1049_s18 = sphi %s1097_s18, %s1305_s18   ;;  %s1045_s17 = sphi %s1095_s17, %s1304_s17   ;;  %s1041_s16 = sphi %s1093_s16, %s1303_s16   ;;  %s1037_s15 = sphi %s1091_s15, %s1302_s15   ;;  %s153_s21 = int_to_ptr.hbm [resolvable:$true] %s152_s21 }
   0x7   : > { %p760_p0 = scmp.ge.s32.totalorder %s1049_s18, 1  ;;  %p42_p1 = scmp.eq.s32.totalorder %s1115_s22, 0 }
   0x8   : > { %p141_p2 = scmp.lt.s32.totalorder %s1049_s18, 3  ;;  %s1051_s24 = smov [#allocation5]  }
   0x9   : > { %s154_s25 = sshll.u32 %s1051_s24, 4  ;;  %s166_s28 = sshll.u32 %s1292_s2, 4  ;;  %s155_s25 = int_to_ptr.vmem [resolvable:$true] %s154_s25  ;;  %s167_s28 = int_to_ptr.hbm [resolvable:$true] %s166_s28 }
   0xa   : > { %p1120_p3 = pnand %p760_p0, %p141_p2  ;;  %s1052_s29 = smov [#allocation7]  }
   0xb   : > { %s168_s30 = sshll.u32 %s1052_s29, 4  ;;  %s1053_s5 = smov 128   ;;  %s169_s30 = int_to_ptr.vmem [resolvable:$true] %s168_s30 }
   0xc   : > { %p804_p4 = pneg %p1120_p3  ;;  %s1054_s6 = smov 8  }
   0xd   : > { %s759_s7 = sadd.s32 4294967294, %s1049_s18   ;;  %s1134_s8 = sadd.s32 1, %s1049_s18  }
   0xe   : > { %p805_p6 = pnand %p804_p4, %p42_p1  ;;  %s25_s9 = ssub.s32 %s1049_s18, %s1134_s8 }
   0xf   : > { %s28_s10 = sadd.s32 1, %s1045_s17  ;;  %p26_p7 = scmp.eq.s32.totalorder %s25_s9, 0 }
  0x10   : > { %807 = dma.hbm_to_vmem [thread:$0]  (!%p805_p6), %s153_s21, 512, %s155_s25, [#allocation6], %s1053_s5, %s1053_s5, %s1054_s6  }
  0x11   : > { %810 = dma.hbm_to_vmem [thread:$0]  (!%p805_p6), %s167_s28, 512, %s169_s30, [#allocation6], %s1053_s5, %s1053_s5, %s1054_s6  }
  0x12   : > { %p35_p8 = scmp.ne.s32.totalorder %s1045_s17, %s1041_s16  ;;  %p36_p9 = scmp.eq.s32.totalorder %s1049_s18, 0 }
  0x13   : > { %p41_p10 = scmp.ne.s32.totalorder %s1041_s16, %s1037_s15  ;;  %p128_p13 = scmp.eq.s32.totalorder %s1115_s22, 1 }
  0x14   : > { %s1145_s11 = scalar_select %p26_p7, %s1045_s17, %s28_s10  }
  0x15   : > { %p1147_p11 = por %p36_p9, %p35_p8  ;;  %p1153_p12 = por %p42_p1, %p41_p10 }
  0x16   : > { %p134_p0 = scmp.eq.s32.totalorder %s759_s7, 1  ;;  %p821_p2 = scmp.lt.s32.totalorder %s1049_s18, 2 }
  0x17   : > { %s185_s14 = sand.u32 1, %s1045_s17   ;;  %p1160_p4 = por %p128_p13, %p35_p8 }
  0x18   : > { %p1164_p6 = por %p134_p0, %p41_p10  ;;  %s764_s21 = sshll.u32 %s185_s14, 3 }
  0x19   : > { %s765_s24 = sshll.u32 %s1049_s18, 3  ;;  %s189_s28 = scalar_lea.vmem [#allocation2], %s764_s21 }
  0x1a   : > { %s193_s27 = scalar_lea.hbm %s1290_s0, %s765_s24  ;;  %s197_s29 = sshll.u32 %s189_s28, 4  ;;  %s198_s29 = int_to_ptr.vmem [resolvable:$true] %s197_s29 }
  0x1b   : > { %s195_s30 = sshll.u32 %s193_s27, 4  ;;  %p1174_p7 = pnand %p821_p2, %p1147_p11  ;;  %s196_s30 = int_to_ptr.hbm [resolvable:$true] %s195_s30 }
  0x1c   : > { %s186_s6 = scalar_lea.sflag [#allocation3], %s185_s14  ;;  %s949_s7 = sshra.s32 %s196_s30, 4  ;;  %s950_s7 = int_to_ptr.hbm [resolvable:$true] %s949_s7 }
  0x1d   : > { %s951_s9 = scalar_lea.hbm %s950_s7, 8  ;;  %p953_p9 = pneg %p1174_p7 }
  0x1e   : > { %p952_p8 = scmp.ne.s32.totalorder %s950_s7, %s951_s9  ;;  %s956_s24 = scalar_lea.hbm %s1290_s0, 16 }
  0x1f   : > { %p957_p11 = scmp.lt.s32.totalorder %s950_s7, %s1290_s0  ;;  %p958_p0 = scmp.lt.s32.totalorder %s956_s24, %s951_s9 }
  0x20   : > { %p954_p10 = pnand %p953_p9, %p952_p8 }
  0x21   : > { %p959_p2 = por %p958_p0, %p957_p11 }
  0x22   : > { %p955_p13 = pneg %p954_p10 }
  0x24   : > { %p960_p5 = pnand %p959_p2, %p955_p13 }
  0x26   : > { %963 = shalt.err (!%p960_p5)
}
  0x27   : > { %814 = dma.hbm_to_vmem [thread:$0]  (!%p1174_p7), %s196_s30, 128, %s198_s29, %s186_s6  }
  0x28   : > { %206 = sbr.rel (%p1120_p3) target bundleno = 1490 (0x5d2), region = 36  ;;  %s1191_s14 = sand.u32 (!%p1120_p3), 1, %s1041_s16  }
  0x29   : > { %s767_s26 = sshll.u32 (!%p1120_p3), %s1191_s14, 3  ;;  %s209_s27 = scalar_lea.sflag (!%p1120_p3), [#allocation3], %s1191_s14 }
  0x2a   : > { %s212_s28 = scalar_lea.vmem (!%p1120_p3), [#allocation2], %s767_s26 }
  0x2d   : > { %1024 = dma.done.wait (%p1153_p12), %s209_s27, 128  }
  0x2e   : > { %1026 = vsyncadd (%p1153_p12), %s209_s27, 4294967168 }
  0x2f   : > { %1028 = dma.done.wait (%p42_p1), [#allocation6], 1024  }
  0x30   : > { %1030 = vsyncadd (%p42_p1), [#allocation6], 4294966272  ;;  %v252_v0 = vld [vmem:[#allocation5 + $0x18] sm:$0xff]  ;;  %v251_v1 = vld [vmem:[#allocation5 + $0x10] sm:$0xff]  ;;  %vm253_vm0 = vcmask 261120   ;;  %vm290_vm1 = vcmask 64512   ;;  %v282_v13 = vlaneseq }
  0x31   : > { %269 = vmatpush.msra.mxu0 %v252_v0  ;;  %v250_v2 = vld [vmem:[#allocation5 + $0x8] sm:$0xff]  ;;  %v249_v3 = vld [vmem:[#allocation5] sm:$0xff]  ;;  %v248_v4 = vld [vmem:[%s212_s28] sm:$0xff]  ;;  %s1055_s23 = smov 120   ;;  %s1056_s13 = smov 96  }
  0x32   : > { %s1057_s29 = smov 88   ;;  %s1058_s30 = smov 104   ;;  %v277_v6 = vld [vmem:[#allocation7] sm:$0xff]  ;;  %v283_v14 = vshrl.u32 %v282_v13, 7  ;;  %v285_v15 = vand.u32 127, %v282_v13 }
  0x33   : > { %270 = vmatpush.msra.mxu0 %v251_v1  ;;  %s1059_s5 = smov 72   ;;  %s1060_s6 = smov 112  }
  0x34   : > { %vm286_vm2 = vcmp.ge.s32.totalorder %v283_v14, %v285_v15  ;;  %s1061_s7 = smov 64   ;;  %s1062_s9 = smov 80  }
  0x35   : > { %271 = vmatpush.msra.mxu0 %v250_v2  ;;  %s1063_s10 = smov 48   ;;  %s1064_s21 = smov 56  }
  0x36   : > { %s1065_s24 = smov 40   ;;  %s789_s25 = sshll.u32 %s1115_s22, 3 }
  0x37   : > { %272 = vmatpush.msra.mxu0 %v249_v3  ;;  %s665_s28 = scalar_lea.hbm %s1294_s4, %s789_s25  ;;  %s655_s22 = scalar_lea.sflag [#allocation4], %s1191_s14 }
  0x38   : > { %771 = vmatmul.msk.f32.vlgmr.msra.gmra.mxu0 %vm253_vm0, %v248_v4 }
  0xb5   : > { %v1206_v5 = vpop.f32.mrf.mxu0 }
  0xb6   : > { %356 = vrot.lane.b32.xlu2 %v1206_v5, %s1055_s23  ;;  %288 = vrot.lane.b32.xlu0 %v1206_v5, %s1056_s13 }
  0xb7   : > { %772 = vmatpush.xpose.msk.msra.mxu1 %vm290_vm1, %v1206_v5 }
  0xbe   : > { %354 = vrot.lane.b32.xlu2 %v1206_v5, %s1057_s29  ;;  %s247_s29 = scalar_lea.vmem [#allocation8], %s767_s26  ;;  %s999_s26 = scalar_lea.hbm %s1294_s4, 16 }
  0xc6   : > { %560 = vrot.lane.b32.xlu2 %v1206_v5, %s1058_s30  ;;  %s667_s30 = sshll.u32 %s247_s29, 4  ;;  %s668_s30 = int_to_ptr.vmem [resolvable:$true] %s667_s30 }
  0xce   : > { %558 = vrot.lane.b32.xlu2 %v1206_v5, %s1059_s5  ;;  %s669_s5 = sshll.u32 %s665_s28, 4  ;;  %s670_s5 = int_to_ptr.hbm [resolvable:$true] %s669_s5 }
  0xd6   : > { %469 = vrot.lane.b32.xlu2 %v1206_v5, %s1060_s6  ;;  %s993_s6 = sshra.s32 %s670_s5, 4  ;;  %s994_s6 = int_to_ptr.hbm [resolvable:$true] %s993_s6 }
  0xd7   : > { %p1000_p12 = scmp.lt.s32.totalorder %s994_s6, %s1294_s4 }
 0x110   : > { %v357_v7 = vpop.permute.xlu2 %356 }
 0x111   : > { %775 = vmatpush.xpose.msk.msra.mxu3 %vm290_vm1, %v357_v7 }
 0x115   : > { %462 = vmatpush.msrb.mxu3 %v277_v6 }
 0x118   : > { %v355_v8 = vpop.permute.xlu2 %354 }
 0x119   : > { %776 = vmatmul.msk.f32.vlgmr.msra.gmra.mxu3 %vm290_vm1, %v355_v8  ;;  %v278_v8 = vld [vmem:[#allocation7 + $0x8] sm:$0xff] }
 0x11a   : > { %439 = vmatpush.msrb.mxu1 %v278_v8 }
 0x120   : > { %v561_v9 = vpop.permute.xlu2 %560 }
 0x121   : > { %784 = vmatpush.xpose.msk.msra.mxu3 %vm290_vm1, %v561_v9  ;;  %v279_v9 = vld [vmem:[#allocation7 + $0x10] sm:$0xff] }
 0x128   : > { %v559_v10 = vpop.permute.xlu2 %558  ;;  %v289_v11 = vpop.permute.xlu0 %288 }
 0x129   : > { %773 = vmatmul.msk.f32.vlgmr.msra.gmra.mxu1 %vm290_vm1, %v289_v11  ;;  %v280_v11 = vld [vmem:[#allocation7 + $0x18] sm:$0xff] }
 0x12a   : > { %552 = vmatpush.msra.mxu1 %v279_v9 }
 0x130   : > { %v470_v12 = vpop.permute.xlu2 %469 }
 0x131   : > { %780 = vmatpush.xpose.msk.msrb.mxu0 %vm290_vm1, %v470_v12 }
 0x19c   : > { %v379_v16 = vpop.f32.mrf.mxu3 }
 0x19d   : > { %v382_v17 = vmul.f32 0.35355338, %v379_v16 }
 0x19f   : > { %v383_v18 = vsel %vm286_vm2, %v382_v17, -1e+30  ;;  %v872_v17 = vld [vmem:[%s1293_s3] ss:$0 sm:$0xff] }
 0x1a0   : > { %v384_v19 = vsel %vm290_vm1, %v383_v18, -inf }
 0x1a1   : > { %385 = vmax.xlane.f32.xlu2 %v384_v19 }
 0x1a6   : > { %v312_v20 = vpop.f32.mrf.mxu1 }
 0x1a7   : > { %v315_v21 = vmul.f32 0.35355338, %v312_v20 }
 0x1a9   : > { %v316_v22 = vsel %vm286_vm2, %v315_v21, -1e+30 }
 0x1aa   : > { %v317_v23 = vsel %vm290_vm1, %v316_v22, -inf }
 0x1ab   : > { %318 = vmax.xlane.f32.xlu0 %v317_v23 }
 0x214   : > { %v386_v39 = vpop.xlane.xlu2 %385 }
 0x215   : > { %v387_v41 = vsub.f32 %v383_v18, %v386_v39 }
 0x217   : > { %v388_v42 = vmul.f32 1.442695, %v387_v41 }
 0x21e   : > { %v319_v24 = vpop.xlane.xlu0 %318 }
 0x21f   : > { %v320_v25 = vsub.f32 %v316_v22, %v319_v24 }
 0x221   : > { %v321_v26 = vmul.f32 1.442695, %v320_v25 }
 0x223   : > { %873 = vpow2.f32 %v321_v26 }
 0x229   : > { %v874_v27 = vpop.eup %873 }
 0x22a   : > { %v323_v28 = vsel %vm290_vm1, %v874_v27, 0.0 }
 0x22b   : > { %324 = vadd.xlane.f32.xlu1 %v323_v28 }
 0x244   : > { %328 = vrot.lane.b32.xlu1 %v1206_v5, %s1061_s7  ;;  %s995_s7 = scalar_lea.hbm %s994_s6, 8 }
 0x245   : > { %p996_p1 = scmp.ne.s32.totalorder %s994_s6, %s995_s7  ;;  %p1001_p7 = scmp.lt.s32.totalorder %s999_s26, %s995_s7 }
 0x247   : > { %p997_p3 = pnand %p996_p1, %p1160_p4  ;;  %p1002_p8 = por %p1001_p7, %p1000_p12 }
 0x249   : > { %p998_p5 = pneg %p997_p3 }
 0x24b   : > { %p1003_p9 = pnand %p1002_p8, %p998_p5 }
 0x24c   : > { %467 = vrot.lane.b32.xlu1 %v1206_v5, %s1062_s9 }
 0x29e   : > { %v325_v29 = vpop.xlane.xlu1 %324 }
 0x29f   : > { %875 = vrcp.f32 %v325_v29 }
 0x2a0   : > { %877 = vpow2.f32 %v388_v42 }
 0x2a5   : > { %v876_v30 = vpop.eup %875 }
 0x2a6   : > { %v327_v32 = vmul.f32 %v876_v30, %v874_v27  ;;  %v878_v50 = vpop.eup %877 }
 0x2a7   : > { %v390_v51 = vsel %vm290_vm1, %v878_v50, 0.0 }
 0x2b6   : > { %v329_v31 = vpop.permute.xlu1 %328 }
 0x2b7   : > { %349 = vmatpush.msra.mxu2 %v329_v31 }
 0x2b8   : > { %774 = vmatmul.msk.f32.vlgmr.msra.gmra.mxu2 %vm290_vm1, %v327_v32 }
 0x2be   : > { %v468_v33 = vpop.permute.xlu1 %467 }
 0x2bf   : > { %781 = vmatmul.msk.f32.vlgmr.msrb.gmra.mxu0 %vm290_vm1, %v468_v33 }
 0x33b   : > { %v351_v34 = vpop.f32.mrf.mxu2 }
 0x33c   : > { %779 = vmatmul.msk.f32.vlgmr.msrb.gmra.mxu3 %vm290_vm1, %v351_v34  ;;  %v492_v35 = vpop.f32.mrf.mxu0 }
 0x33d   : > { %v495_v36 = vmul.f32 0.35355338, %v492_v35 }
 0x33f   : > { %v496_v37 = vsel %vm286_vm2, %v495_v36, -1e+30 }
 0x340   : > { %v497_v38 = vsel %vm290_vm1, %v496_v37, -inf }
 0x341   : > { %498 = vmax.xlane.f32.xlu1 %v497_v38 }
 0x344   : > { %785 = vmatmul.msk.f32.vlgmr.msra.gmra.mxu3 %vm290_vm1, %v559_v10 }
 0x35a   : > { %508 = vrot.lane.b32.xlu1 %v1206_v5, %s1063_s10 }
 0x3b4   : > { %v499_v43 = vpop.xlane.xlu1 %498 }
 0x3b5   : > { %v500_v46 = vsub.f32 %v496_v37, %v499_v43 }
 0x3b7   : > { %v501_v49 = vmul.f32 1.442695, %v500_v46 }
 0x3b9   : > { %879 = vpow2.f32 %v501_v49 }
 0x3bf   : > { %v1235_v40 = vpop.f32.mrf.mxu3  ;;  %v880_v52 = vpop.eup %879 }
 0x3c0   : > { %v503_v53 = vsel %vm290_vm1, %v880_v52, 0.0 }
 0x3c7   : > { %v583_v44 = vpop.f32.mrf.mxu3 }
 0x3c8   : > { %v586_v45 = vmul.f32 0.35355338, %v583_v44 }
 0x3ca   : > { %v587_v47 = vsel %vm286_vm2, %v586_v45, -1e+30 }
 0x3cb   : > { %v588_v48 = vsel %vm290_vm1, %v587_v47, -inf }
 0x3cc   : > { %589 = vmax.xlane.f32.xlu0 %v588_v48  ;;  %v509_v0 = vpop.permute.xlu1 %508 }
 0x3d4   : > { %391 = vadd.xlane.f32.xlu0 %v390_v51 }
 0x3dc   : > { %504 = vadd.xlane.f32.xlu0 %v503_v53 }
 0x3f0   : > { %395 = vrot.lane.b32.xlu0 %v1206_v5, %s1064_s21 }
 0x43f   : > { %v590_v54 = vpop.xlane.xlu0 %589 }
 0x440   : > { %v591_v55 = vsub.f32 %v587_v47, %v590_v54 }
 0x442   : > { %v592_v56 = vmul.f32 1.442695, %v591_v55 }
 0x444   : > { %881 = vpow2.f32 %v592_v56 }
 0x447   : > { %v392_v59 = vpop.xlane.xlu0 %391 }
 0x448   : > { %883 = vrcp.f32 %v392_v59 }
 0x44a   : > { %v882_v57 = vpop.eup %881 }
 0x44b   : > { %v594_v58 = vsel %vm290_vm1, %v882_v57, 0.0 }
 0x44c   : > { %595 = vadd.xlane.f32.xlu2 %v594_v58 }
 0x44e   : > { %v884_v61 = vpop.eup %883 }
 0x44f   : > { %v505_v60 = vpop.xlane.xlu0 %504  ;;  %v394_v63 = vmul.f32 %v884_v61, %v878_v50 }
 0x450   : > { %885 = vrcp.f32 %v505_v60 }
 0x456   : > { %v886_v1 = vpop.eup %885 }
 0x457   : > { %v507_v2 = vmul.f32 %v886_v1, %v880_v52 }
 0x462   : > { %v396_v62 = vpop.permute.xlu0 %395 }
 0x463   : > { %416 = vmatpush.msrb.mxu2 %v396_v62 }
 0x464   : > { %599 = vrot.lane.b32.xlu2 %v1206_v5, %s1065_s24  ;;  %777 = vmatmul.msk.f32.vlgmr.msrb.gmra.mxu2 %vm290_vm1, %v394_v63 }
 0x465   : > { %529 = vmatpush.msra.mxu2 %v509_v0 }
 0x467   : > { %643 = vmatpush.msrb.mxu2 %v280_v11 }
 0x46c   : > { %782 = vmatmul.msk.f32.vlgmr.msra.gmra.mxu2 %vm290_vm1, %v507_v2 }
 0x4bf   : > { %v596_v3 = vpop.xlane.xlu2 %595 }
 0x4c0   : > { %887 = vrcp.f32 %v596_v3 }
 0x4c6   : > { %v888_v4 = vpop.eup %887 }
 0x4c7   : > { %v598_v6 = vmul.f32 %v888_v4, %v882_v57  ;;  %v600_v7 = vpop.permute.xlu2 %599 }
 0x4c8   : > { %620 = vmatpush.msra.mxu0 %v600_v7 }
 0x4c9   : > { %786 = vmatmul.msk.f32.vlgmr.msra.gmra.mxu0 %vm290_vm1, %v598_v6 }
 0x4e7   : > { %v418_v5 = vpop.f32.mrf.mxu2 }
 0x4e8   : > { %778 = vmatmul.msk.f32.vlgmr.msrb.gmra.mxu1 %vm290_vm1, %v418_v5 }
 0x4ef   : > { %v531_v10 = vpop.f32.mrf.mxu2 }
 0x4f0   : > { %783 = vmatmul.msk.f32.vlgmr.msra.gmra.mxu1 %vm290_vm1, %v531_v10 }
 0x546   : > { %v622_v12 = vpop.f32.mrf.mxu0 }
 0x547   : > { %787 = vmatmul.msk.f32.vlgmr.msrb.gmra.mxu2 %vm290_vm1, %v622_v12 }
 0x565   : > { %v441_v13 = vpop.f32.mrf.mxu1 }
 0x566   : > { %v465_v15 = vadd.f32 %v1235_v40, %v441_v13 }
 0x56d   : > { %v554_v14 = vpop.f32.mrf.mxu1 }
 0x56e   : > { %v557_v16 = vadd.f32 %v554_v14, %v465_v15 }
 0x5ca   : > { %v645_v18 = vpop.f32.mrf.mxu2 }
 0x5cb   : > { %v648_v19 = vadd.f32 %v645_v18, %v557_v16 }
 0x5cd   : > { %v652_v20 = vadd.f32 %v872_v17, %v648_v19 }
 0x5cf   : > { %653 = vst.msk [vmem:[%s247_s29] sm:$0xff] %vm253_vm0, %v652_v20 }
 0x5d0   : > { %1006 = shalt.err (!%p1003_p9)
}
 0x5d1   : > { %802 = dma.vmem_to_hbm [thread:$0]  (%p1160_p4), %s668_s30, 128, %s670_s5, %s655_s22  }
 0x5d2 PF: > { %s681_s14 = sand.u32 1, %s1037_s15   ;;  %p1301_p10 = scmp.ge.s32.totalorder %s1049_s18, 2 }
 0x5d3   : > { %s682_s25 = scalar_lea.sflag [#allocation4], %s681_s14 }
 0x5d4   : > { %p816_p13 = pnand %p1301_p10, %p1164_p6 }
 0x5d6   : > { %p817_p11 = pneg %p816_p13 }
 0x5d8   : > { %1032 = dma.done.wait (%p817_p11), %s682_s25, 128  }
 0x5d9   : > { %1034 = vsyncadd (%p817_p11), %s682_s25, 4294967168  ;;  %p18_p0 = scmp.ge.s32.totalorder %s1134_s8, 4   ;;  %s1302_s15 = smov %s1041_s16 }
 0x5da   : > { %s1303_s16 = smov %s1045_s17  ;;  %s1304_s17 = smov %s1145_s11 }
 0x5db   : > { %s1305_s18 = smov %s1134_s8  ;;  %20 = sbr.rel (!%p18_p0) target bundleno = 6 (0x6), region = 89 }
 0x5e0   :  { %688 = vsyncpa [#allocation3], 1 }
 0x5e1   :  { %690 = vsyncpa [#allocation3 + $0x1], 1 }
 0x5e2   :  { %691 = vsyncpa [#allocation6], 1 }
 0x5e3   :  { %692 = vsyncpa [#allocation4], 1 }
 0x5e4   :  { %694 = vsyncpa [#allocation4 + $0x1], 1 }

</bundles_post_ra>
